<compile_context>
chip_gen: v7x
topology: tpu7x:2x2x1
jax: 0.10.0
libtpu: 0.0.40
codegen_flags: <defaults>
</compile_context>

<pallas_src>
import functools

import numpy as np
import jax
import jax.numpy as jnp
from jax import lax
from jax.experimental import pallas as pl
from jax.experimental.pallas import tpu as pltpu

EPS = 1e-5  # torch.nn.InstanceNorm2d default

# 3x3 tap offsets, (dh, dw) row-major — matches conv weight (kh, kw) order.
_TAPS = tuple((dh, dw) for dh in (-1, 0, 1) for dw in (-1, 0, 1))


def _build_tap_masks(H, W):
    """(9, 1, H*W) float masks: 1.0 where output pos (h, w) has a valid
    in-bounds neighbor (h+dh, w+dw) for tap t, else 0.0 (zero padding)."""
    HW = H * W
    masks = np.zeros((9, 1, HW), dtype=np.float32)
    for t, (dh, dw) in enumerate(_TAPS):
        m = np.zeros((H, W), dtype=np.float32)
        m[max(0, -dh):H - max(0, dh), max(0, -dw):W - max(0, dw)] = 1.0
        masks[t, 0, :] = m.reshape(HW)
    return masks


# ---------------------------------------------------------------------------
# Fused kernel: conv1 -> IN1 -> ReLU -> conv2 -> IN2 -> +x   (one sample)
# Activations live as (C, HW) with HW on the lane axis (lane-dense).
# ---------------------------------------------------------------------------
def _fused_residual_kernel(x_ref, mask_ref, w1_ref, w2_ref,
                           g1_ref, b1_ref, g2_ref, b2_ref, o_ref,
                           stack_ref, *, width):
    x = x_ref[0].astype(jnp.float32)            # (C, HW)
    C, hw = x.shape

    def conv3x3(v, w_ref):
        # Scatter the 9 shifted/masked taps into the (9*C, HW) K-stack in
        # VMEM, then contract against the (C, 9*C) weight in ONE MXU matmul.
        for t, (dh, dw) in enumerate(_TAPS):
            off = dh * width + dw               # flat-index offset of this tap
            if off == 0:
                tap = v                         # center tap is always in-bounds
            else:
                # rolled[p] = v[(p + off) % HW]; boundary wrap is zeroed by mask
                tap = pltpu.roll(v, shift=(-off) % hw, axis=1) * mask_ref[t]
            stack_ref[pl.ds(t * C, C), :] = tap
        return jnp.dot(w_ref[...], stack_ref[...],
                       preferred_element_type=jnp.float32)   # (C, HW) f32

    def instance_norm(v, g, b):
        # one-pass biased stats over the spatial (lane) axis, f32 throughout
        inv_n = 1.0 / hw
        mean = jnp.sum(v, axis=1, keepdims=True) * inv_n            # (C, 1)
        var = jnp.sum(v * v, axis=1, keepdims=True) * inv_n - mean * mean
        return (v - mean) * (lax.rsqrt(var + EPS) * g) + b

    h = conv3x3(x, w1_ref)
    h = jnp.maximum(instance_norm(h, g1_ref[...], b1_ref[...]), 0.0)
    h = conv3x3(h, w2_ref)
    h = instance_norm(h, g2_ref[...], b2_ref[...])
    o_ref[0] = (x + h).astype(o_ref.dtype)      # lane-dense (C, HW) store


def residual_block(x_nchw, params):
    N, C, H, W = x_nchw.shape
    HW = H * W
    x_flat = x_nchw.reshape(N, C, HW)           # free reshape (row-major NCHW)

    # Weights as a single (Cout, 9*Cin) matrix; K ordering is tap-major,
    # channel-minor, matching the in-kernel tap stack (tap order = _TAPS).
    w1t = jnp.transpose(params["w1"], (0, 2, 3, 1)).reshape(C, 9 * C)
    w2t = jnp.transpose(params["w2"], (0, 2, 3, 1)).reshape(C, 9 * C)
    g1 = params["g1"].reshape(C, 1).astype(jnp.float32)
    b1 = params["b1"].reshape(C, 1).astype(jnp.float32)
    g2 = params["g2"].reshape(C, 1).astype(jnp.float32)
    b2 = params["b2"].reshape(C, 1).astype(jnp.float32)
    masks = jnp.asarray(_build_tap_masks(H, W))

    rep3 = lambda n: (0, 0, 0)   # replicated (constant) blocks
    rep2 = lambda n: (0, 0)

    out_flat = pl.pallas_call(
        functools.partial(_fused_residual_kernel, width=W),
        out_shape=jax.ShapeDtypeStruct((N, C, HW), x_nchw.dtype),
        grid_spec=pltpu.PrefetchScalarGridSpec(
            num_scalar_prefetch=0,
            grid=(N,),                                   # one fused sample/step
            in_specs=[
                pl.BlockSpec((1, C, HW), lambda n: (n, 0, 0)),   # x (per sample)
                pl.BlockSpec((9, 1, HW), rep3),                  # tap masks
                pl.BlockSpec((C, 9 * C), rep2),                  # conv1 weights
                pl.BlockSpec((C, 9 * C), rep2),                  # conv2 weights
                pl.BlockSpec((C, 1), rep2),                      # gamma1
                pl.BlockSpec((C, 1), rep2),                      # beta1
                pl.BlockSpec((C, 1), rep2),                      # gamma2
                pl.BlockSpec((C, 1), rep2),                      # beta2
            ],
            out_specs=pl.BlockSpec((1, C, HW), lambda n: (n, 0, 0)),
            scratch_shapes=[pltpu.VMEM((9 * C, HW), jnp.float32)],  # tap K-stack
        ),
        compiler_params=pltpu.CompilerParams(
            dimension_semantics=("parallel",)),          # one sample per TC on v7x
    )(x_flat, masks, w1t, w2t, g1, b1, g2, b2)

    return out_flat.reshape(N, C, H, W)                  # NCHW


# ---------------------------------------------------------------------------
# Pure-JAX reference (for correctness checking)
# ---------------------------------------------------------------------------
def _reference(x, params):
    def conv(x, w):
        return lax.conv_general_dilated(
            x, w, window_strides=(1, 1), padding=((1, 1), (1, 1)),
            dimension_numbers=("NCHW", "OIHW", "NCHW"))

    def inorm(x, g, b):
        mean = x.mean(axis=(2, 3), keepdims=True)
        var = ((x - mean) ** 2).mean(axis=(2, 3), keepdims=True)
        xn = (x - mean) * lax.rsqrt(var + EPS)
        return xn * g.reshape(1, -1, 1, 1) + b.reshape(1, -1, 1, 1)

    h = jnp.maximum(inorm(conv(x, params["w1"]), params["g1"], params["b1"]), 0.0)
    h = inorm(conv(h, params["w2"]), params["g2"], params["b2"])
    return x + h


# ---------------------------------------------------------------------------
# Main
# ---------------------------------------------------------------------------
if __name__ == "__main__":
    N, C, H, W = 2, 4, 16, 16          # inDim == outDim == C (required by module)
    key = jax.random.PRNGKey(0)
    kx, k1, k2, k3, k4 = jax.random.split(key, 5)

    x = jax.random.normal(kx, (N, C, H, W), dtype=jnp.float32)

    params = {
        "w1": 0.1 * jax.random.normal(k1, (C, C, 3, 3), dtype=jnp.float32),
        "g1": 1.0 + 0.1 * jax.random.normal(k3, (C,), dtype=jnp.float32),
        "b1": 0.1 * jax.random.normal(k4, (C,), dtype=jnp.float32),
        "w2": 0.1 * jax.random.normal(k2, (C, C, 3, 3), dtype=jnp.float32),
        "g2": jnp.ones((C,), dtype=jnp.float32),
        "b2": jnp.zeros((C,), dtype=jnp.float32),
    }

    out = jax.jit(residual_block)(x, params)
    out = jax.block_until_ready(out)

    ref = jax.block_until_ready(_reference(x, params))
    assert out.shape == (N, C, H, W)
    assert jnp.allclose(out, ref, atol=2e-2, rtol=2e-2), float(jnp.max(jnp.abs(out - ref)))

    print("KERNEL_OK")
</pallas_src>

<mosaic_0001>
module attributes {stable_mosaic.version = 11 : i64} {
  func.func @_fused_residual_kernel(%arg0: i32, %arg1: memref<1x4x256xf32, #tpu.memory_space<vmem>>, %arg2: memref<9x1x256xf32, #tpu.memory_space<vmem>>, %arg3: memref<4x36xf32, #tpu.memory_space<vmem>>, %arg4: memref<4x36xf32, #tpu.memory_space<vmem>>, %arg5: memref<4x1xf32, #tpu.memory_space<vmem>>, %arg6: memref<4x1xf32, #tpu.memory_space<vmem>>, %arg7: memref<4x1xf32, #tpu.memory_space<vmem>>, %arg8: memref<4x1xf32, #tpu.memory_space<vmem>>, %arg9: memref<1x4x256xf32, #tpu.memory_space<vmem>>, %arg10: memref<36x256xf32, #tpu.memory_space<vmem>>) attributes {dimension_semantics = [#tpu.dimension_semantics<parallel>], iteration_bounds = array<i64: 2>, scalar_prefetch = 0 : i64, scratch_operands = 1 : i64, tpu.core_type = #tpu.core_type<tc>, window_params = [{transform_indices = @transform_0, window_bounds = array<i64: 1, 4, 256>}, {pipeline_mode = #tpu.pipeline_mode<synchronous>, transform_indices = @transform_1, window_bounds = array<i64: 9, 1, 256>}, {pipeline_mode = #tpu.pipeline_mode<synchronous>, transform_indices = @transform_2, window_bounds = array<i64: 4, 36>}, {pipeline_mode = #tpu.pipeline_mode<synchronous>, transform_indices = @transform_3, window_bounds = array<i64: 4, 36>}, {pipeline_mode = #tpu.pipeline_mode<synchronous>, transform_indices = @transform_4, window_bounds = array<i64: 4, 1>}, {pipeline_mode = #tpu.pipeline_mode<synchronous>, transform_indices = @transform_5, window_bounds = array<i64: 4, 1>}, {pipeline_mode = #tpu.pipeline_mode<synchronous>, transform_indices = @transform_6, window_bounds = array<i64: 4, 1>}, {pipeline_mode = #tpu.pipeline_mode<synchronous>, transform_indices = @transform_7, window_bounds = array<i64: 4, 1>}, {transform_indices = @transform_8, window_bounds = array<i64: 1, 4, 256>}]} {
    %c0 = arith.constant 0 : index
    %c0_0 = arith.constant 0 : index
    %c0_1 = arith.constant 0 : index
    %0 = vector.load %arg1[%c0, %c0_0, %c0_1] : memref<1x4x256xf32, #tpu.memory_space<vmem>>, vector<1x4x256xf32>
    %1 = vector.shape_cast %0 : vector<1x4x256xf32> to vector<4x256xf32>
    %c17_i32 = arith.constant 17 : i32
    %2 = tpu.dynamic_rotate %1 by %c17_i32 dim 1 : vector<4x256xf32>, i32 -> vector<4x256xf32>
    %c0_2 = arith.constant 0 : index
    %c0_3 = arith.constant 0 : index
    %c0_4 = arith.constant 0 : index
    %3 = vector.load %arg2[%c0_2, %c0_3, %c0_4] : memref<9x1x256xf32, #tpu.memory_space<vmem>>, vector<1x1x256xf32>
    %4 = vector.shape_cast %3 : vector<1x1x256xf32> to vector<1x256xf32>
    %5 = vector.broadcast %4 : vector<1x256xf32> to vector<4x256xf32>
    %6 = arith.mulf %2, %5 : vector<4x256xf32>
    %c0_5 = arith.constant 0 : index
    %c0_6 = arith.constant 0 : index
    %7 = vector.load %arg10[%c0_5, %c0_6] : memref<36x256xf32, #tpu.memory_space<vmem>>, vector<4x256xf32>
    tpu.vector_store %arg10[%c0_5, %c0_6], %6 {strides = array<i32>} : memref<36x256xf32, #tpu.memory_space<vmem>>, vector<4x256xf32>,
    %c16_i32 = arith.constant 16 : i32
    %8 = tpu.dynamic_rotate %1 by %c16_i32 dim 1 : vector<4x256xf32>, i32 -> vector<4x256xf32>
    %c1 = arith.constant 1 : index
    %c0_7 = arith.constant 0 : index
    %c0_8 = arith.constant 0 : index
    %9 = vector.load %arg2[%c1, %c0_7, %c0_8] : memref<9x1x256xf32, #tpu.memory_space<vmem>>, vector<1x1x256xf32>
    %10 = vector.shape_cast %9 : vector<1x1x256xf32> to vector<1x256xf32>
    %11 = vector.broadcast %10 : vector<1x256xf32> to vector<4x256xf32>
    %12 = arith.mulf %8, %11 : vector<4x256xf32>
    %c4 = arith.constant 4 : index
    %c0_9 = arith.constant 0 : index
    %13 = vector.load %arg10[%c4, %c0_9] : memref<36x256xf32, #tpu.memory_space<vmem>>, vector<4x256xf32>
    tpu.vector_store %arg10[%c4, %c0_9], %12 {strides = array<i32>} : memref<36x256xf32, #tpu.memory_space<vmem>>, vector<4x256xf32>,
    %c15_i32 = arith.constant 15 : i32
    %14 = tpu.dynamic_rotate %1 by %c15_i32 dim 1 : vector<4x256xf32>, i32 -> vector<4x256xf32>
    %c2 = arith.constant 2 : index
    %c0_10 = arith.constant 0 : index
    %c0_11 = arith.constant 0 : index
    %15 = vector.load %arg2[%c2, %c0_10, %c0_11] : memref<9x1x256xf32, #tpu.memory_space<vmem>>, vector<1x1x256xf32>
    %16 = vector.shape_cast %15 : vector<1x1x256xf32> to vector<1x256xf32>
    %17 = vector.broadcast %16 : vector<1x256xf32> to vector<4x256xf32>
    %18 = arith.mulf %14, %17 : vector<4x256xf32>
    %c8 = arith.constant 8 : index
    %c0_12 = arith.constant 0 : index
    %19 = vector.load %arg10[%c8, %c0_12] : memref<36x256xf32, #tpu.memory_space<vmem>>, vector<4x256xf32>
    tpu.vector_store %arg10[%c8, %c0_12], %18 {strides = array<i32>} : memref<36x256xf32, #tpu.memory_space<vmem>>, vector<4x256xf32>,
    %c1_i32 = arith.constant 1 : i32
    %20 = tpu.dynamic_rotate %1 by %c1_i32 dim 1 : vector<4x256xf32>, i32 -> vector<4x256xf32>
    %c3 = arith.constant 3 : index
    %c0_13 = arith.constant 0 : index
    %c0_14 = arith.constant 0 : index
    %21 = vector.load %arg2[%c3, %c0_13, %c0_14] : memref<9x1x256xf32, #tpu.memory_space<vmem>>, vector<1x1x256xf32>
    %22 = vector.shape_cast %21 : vector<1x1x256xf32> to vector<1x256xf32>
    %23 = vector.broadcast %22 : vector<1x256xf32> to vector<4x256xf32>
    %24 = arith.mulf %20, %23 : vector<4x256xf32>
    %c12 = arith.constant 12 : index
    %c0_15 = arith.constant 0 : index
    %25 = vector.load %arg10[%c12, %c0_15] : memref<36x256xf32, #tpu.memory_space<vmem>>, vector<4x256xf32>
    tpu.vector_store %arg10[%c12, %c0_15], %24 {strides = array<i32>} : memref<36x256xf32, #tpu.memory_space<vmem>>, vector<4x256xf32>,
    %c16 = arith.constant 16 : index
    %c0_16 = arith.constant 0 : index
    %26 = vector.load %arg10[%c16, %c0_16] : memref<36x256xf32, #tpu.memory_space<vmem>>, vector<4x256xf32>
    tpu.vector_store %arg10[%c16, %c0_16], %1 {strides = array<i32>} : memref<36x256xf32, #tpu.memory_space<vmem>>, vector<4x256xf32>,
    %c255_i32 = arith.constant 255 : i32
    %27 = tpu.dynamic_rotate %1 by %c255_i32 dim 1 : vector<4x256xf32>, i32 -> vector<4x256xf32>
    %c5 = arith.constant 5 : index
    %c0_17 = arith.constant 0 : index
    %c0_18 = arith.constant 0 : index
    %28 = vector.load %arg2[%c5, %c0_17, %c0_18] : memref<9x1x256xf32, #tpu.memory_space<vmem>>, vector<1x1x256xf32>
    %29 = vector.shape_cast %28 : vector<1x1x256xf32> to vector<1x256xf32>
    %30 = vector.broadcast %29 : vector<1x256xf32> to vector<4x256xf32>
    %31 = arith.mulf %27, %30 : vector<4x256xf32>
    %c20 = arith.constant 20 : index
    %c0_19 = arith.constant 0 : index
    %32 = vector.load %arg10[%c20, %c0_19] : memref<36x256xf32, #tpu.memory_space<vmem>>, vector<4x256xf32>
    tpu.vector_store %arg10[%c20, %c0_19], %31 {strides = array<i32>} : memref<36x256xf32, #tpu.memory_space<vmem>>, vector<4x256xf32>,
    %c241_i32 = arith.constant 241 : i32
    %33 = tpu.dynamic_rotate %1 by %c241_i32 dim 1 : vector<4x256xf32>, i32 -> vector<4x256xf32>
    %c6 = arith.constant 6 : index
    %c0_20 = arith.constant 0 : index
    %c0_21 = arith.constant 0 : index
    %34 = vector.load %arg2[%c6, %c0_20, %c0_21] : memref<9x1x256xf32, #tpu.memory_space<vmem>>, vector<1x1x256xf32>
    %35 = vector.shape_cast %34 : vector<1x1x256xf32> to vector<1x256xf32>
    %36 = vector.broadcast %35 : vector<1x256xf32> to vector<4x256xf32>
    %37 = arith.mulf %33, %36 : vector<4x256xf32>
    %c24 = arith.constant 24 : index
    %c0_22 = arith.constant 0 : index
    %38 = vector.load %arg10[%c24, %c0_22] : memref<36x256xf32, #tpu.memory_space<vmem>>, vector<4x256xf32>
    tpu.vector_store %arg10[%c24, %c0_22], %37 {strides = array<i32>} : memref<36x256xf32, #tpu.memory_space<vmem>>, vector<4x256xf32>,
    %c240_i32 = arith.constant 240 : i32
    %39 = tpu.dynamic_rotate %1 by %c240_i32 dim 1 : vector<4x256xf32>, i32 -> vector<4x256xf32>
    %c7 = arith.constant 7 : index
    %c0_23 = arith.constant 0 : index
    %c0_24 = arith.constant 0 : index
    %40 = vector.load %arg2[%c7, %c0_23, %c0_24] : memref<9x1x256xf32, #tpu.memory_space<vmem>>, vector<1x1x256xf32>
    %41 = vector.shape_cast %40 : vector<1x1x256xf32> to vector<1x256xf32>
    %42 = vector.broadcast %41 : vector<1x256xf32> to vector<4x256xf32>
    %43 = arith.mulf %39, %42 : vector<4x256xf32>
    %c28 = arith.constant 28 : index
    %c0_25 = arith.constant 0 : index
    %44 = vector.load %arg10[%c28, %c0_25] : memref<36x256xf32, #tpu.memory_space<vmem>>, vector<4x256xf32>
    tpu.vector_store %arg10[%c28, %c0_25], %43 {strides = array<i32>} : memref<36x256xf32, #tpu.memory_space<vmem>>, vector<4x256xf32>,
    %c239_i32 = arith.constant 239 : i32
    %45 = tpu.dynamic_rotate %1 by %c239_i32 dim 1 : vector<4x256xf32>, i32 -> vector<4x256xf32>
    %c8_26 = arith.constant 8 : index
    %c0_27 = arith.constant 0 : index
    %c0_28 = arith.constant 0 : index
    %46 = vector.load %arg2[%c8_26, %c0_27, %c0_28] : memref<9x1x256xf32, #tpu.memory_space<vmem>>, vector<1x1x256xf32>
    %47 = vector.shape_cast %46 : vector<1x1x256xf32> to vector<1x256xf32>
    %48 = vector.broadcast %47 : vector<1x256xf32> to vector<4x256xf32>
    %49 = arith.mulf %45, %48 : vector<4x256xf32>
    %c32 = arith.constant 32 : index
    %c0_29 = arith.constant 0 : index
    %50 = vector.load %arg10[%c32, %c0_29] : memref<36x256xf32, #tpu.memory_space<vmem>>, vector<4x256xf32>
    tpu.vector_store %arg10[%c32, %c0_29], %49 {strides = array<i32>} : memref<36x256xf32, #tpu.memory_space<vmem>>, vector<4x256xf32>,
    %c0_30 = arith.constant 0 : index
    %c0_31 = arith.constant 0 : index
    %51 = vector.load %arg3[%c0_30, %c0_31] : memref<4x36xf32, #tpu.memory_space<vmem>>, vector<4x36xf32>
    %c0_32 = arith.constant 0 : index
    %c0_33 = arith.constant 0 : index
    %52 = vector.load %arg10[%c0_32, %c0_33] : memref<36x256xf32, #tpu.memory_space<vmem>>, vector<36x256xf32>
    %cst = arith.constant dense<0.000000e+00> : vector<4x256xf32>
    %53 = tpu.matmul %51, %52, %cst {dimension_numbers = #tpu.dot_dimension_numbers<[1], [0], [0], [1], [0, 0, 1, 1], [], []>} : vector<4x36xf32>, vector<36x256xf32>, vector<4x256xf32> -> vector<4x256xf32>
    %c0_34 = arith.constant 0 : index
    %c0_35 = arith.constant 0 : index
    %54 = vector.load %arg5[%c0_34, %c0_35] : memref<4x1xf32, #tpu.memory_space<vmem>>, vector<4x1xf32>
    %c0_36 = arith.constant 0 : index
    %c0_37 = arith.constant 0 : index
    %55 = vector.load %arg6[%c0_36, %c0_37] : memref<4x1xf32, #tpu.memory_space<vmem>>, vector<4x1xf32>
    %cst_38 = arith.constant dense<0.000000e+00> : vector<4xf32>
    %56 = vector.multi_reduction <add>, %53, %cst_38 [1] : vector<4x256xf32> to vector<4xf32>
    %57 = vector.shape_cast %56 : vector<4xf32> to vector<4x1xf32>
    %cst_39 = arith.constant 3.906250e-03 : f32
    %58 = vector.broadcast %cst_39 : f32 to vector<4x1xf32>
    %59 = arith.mulf %57, %58 : vector<4x1xf32>
    %60 = arith.mulf %53, %53 : vector<4x256xf32>
    %cst_40 = arith.constant dense<0.000000e+00> : vector<4xf32>
    %61 = vector.multi_reduction <add>, %60, %cst_40 [1] : vector<4x256xf32> to vector<4xf32>
    %62 = vector.shape_cast %61 : vector<4xf32> to vector<4x1xf32>
    %cst_41 = arith.constant 3.906250e-03 : f32
    %63 = vector.broadcast %cst_41 : f32 to vector<4x1xf32>
    %64 = arith.mulf %62, %63 : vector<4x1xf32>
    %65 = arith.mulf %59, %59 : vector<4x1xf32>
    %66 = arith.subf %64, %65 : vector<4x1xf32>
    %67 = vector.broadcast %59 : vector<4x1xf32> to vector<4x256xf32>
    %68 = arith.subf %53, %67 : vector<4x256xf32>
    %cst_42 = arith.constant 9.99999974E-6 : f32
    %69 = vector.broadcast %cst_42 : f32 to vector<4x1xf32>
    %70 = arith.addf %66, %69 : vector<4x1xf32>
    %71 = math.rsqrt %70 : vector<4x1xf32>
    %72 = arith.mulf %71, %54 : vector<4x1xf32>
    %73 = vector.broadcast %72 : vector<4x1xf32> to vector<4x256xf32>
    %74 = arith.mulf %68, %73 : vector<4x256xf32>
    %75 = vector.broadcast %55 : vector<4x1xf32> to vector<4x256xf32>
    %76 = arith.addf %74, %75 : vector<4x256xf32>
    %cst_43 = arith.constant 0.000000e+00 : f32
    %77 = vector.broadcast %cst_43 : f32 to vector<4x256xf32>
    %78 = arith.maximumf %76, %77 : vector<4x256xf32>
    %c17_i32_44 = arith.constant 17 : i32
    %79 = tpu.dynamic_rotate %78 by %c17_i32_44 dim 1 : vector<4x256xf32>, i32 -> vector<4x256xf32>
    %c0_45 = arith.constant 0 : index
    %c0_46 = arith.constant 0 : index
    %c0_47 = arith.constant 0 : index
    %80 = vector.load %arg2[%c0_45, %c0_46, %c0_47] : memref<9x1x256xf32, #tpu.memory_space<vmem>>, vector<1x1x256xf32>
    %81 = vector.shape_cast %80 : vector<1x1x256xf32> to vector<1x256xf32>
    %82 = vector.broadcast %81 : vector<1x256xf32> to vector<4x256xf32>
    %83 = arith.mulf %79, %82 : vector<4x256xf32>
    %c0_48 = arith.constant 0 : index
    %c0_49 = arith.constant 0 : index
    %84 = vector.load %arg10[%c0_48, %c0_49] : memref<36x256xf32, #tpu.memory_space<vmem>>, vector<4x256xf32>
    tpu.vector_store %arg10[%c0_48, %c0_49], %83 {strides = array<i32>} : memref<36x256xf32, #tpu.memory_space<vmem>>, vector<4x256xf32>,
    %c16_i32_50 = arith.constant 16 : i32
    %85 = tpu.dynamic_rotate %78 by %c16_i32_50 dim 1 : vector<4x256xf32>, i32 -> vector<4x256xf32>
    %c1_51 = arith.constant 1 : index
    %c0_52 = arith.constant 0 : index
    %c0_53 = arith.constant 0 : index
    %86 = vector.load %arg2[%c1_51, %c0_52, %c0_53] : memref<9x1x256xf32, #tpu.memory_space<vmem>>, vector<1x1x256xf32>
    %87 = vector.shape_cast %86 : vector<1x1x256xf32> to vector<1x256xf32>
    %88 = vector.broadcast %87 : vector<1x256xf32> to vector<4x256xf32>
    %89 = arith.mulf %85, %88 : vector<4x256xf32>
    %c4_54 = arith.constant 4 : index
    %c0_55 = arith.constant 0 : index
    %90 = vector.load %arg10[%c4_54, %c0_55] : memref<36x256xf32, #tpu.memory_space<vmem>>, vector<4x256xf32>
    tpu.vector_store %arg10[%c4_54, %c0_55], %89 {strides = array<i32>} : memref<36x256xf32, #tpu.memory_space<vmem>>, vector<4x256xf32>,
    %c15_i32_56 = arith.constant 15 : i32
    %91 = tpu.dynamic_rotate %78 by %c15_i32_56 dim 1 : vector<4x256xf32>, i32 -> vector<4x256xf32>
    %c2_57 = arith.constant 2 : index
    %c0_58 = arith.constant 0 : index
    %c0_59 = arith.constant 0 : index
    %92 = vector.load %arg2[%c2_57, %c0_58, %c0_59] : memref<9x1x256xf32, #tpu.memory_space<vmem>>, vector<1x1x256xf32>
    %93 = vector.shape_cast %92 : vector<1x1x256xf32> to vector<1x256xf32>
    %94 = vector.broadcast %93 : vector<1x256xf32> to vector<4x256xf32>
    %95 = arith.mulf %91, %94 : vector<4x256xf32>
    %c8_60 = arith.constant 8 : index
    %c0_61 = arith.constant 0 : index
    %96 = vector.load %arg10[%c8_60, %c0_61] : memref<36x256xf32, #tpu.memory_space<vmem>>, vector<4x256xf32>
    tpu.vector_store %arg10[%c8_60, %c0_61], %95 {strides = array<i32>} : memref<36x256xf32, #tpu.memory_space<vmem>>, vector<4x256xf32>,
    %c1_i32_62 = arith.constant 1 : i32
    %97 = tpu.dynamic_rotate %78 by %c1_i32_62 dim 1 : vector<4x256xf32>, i32 -> vector<4x256xf32>
    %c3_63 = arith.constant 3 : index
    %c0_64 = arith.constant 0 : index
    %c0_65 = arith.constant 0 : index
    %98 = vector.load %arg2[%c3_63, %c0_64, %c0_65] : memref<9x1x256xf32, #tpu.memory_space<vmem>>, vector<1x1x256xf32>
    %99 = vector.shape_cast %98 : vector<1x1x256xf32> to vector<1x256xf32>
    %100 = vector.broadcast %99 : vector<1x256xf32> to vector<4x256xf32>
    %101 = arith.mulf %97, %100 : vector<4x256xf32>
    %c12_66 = arith.constant 12 : index
    %c0_67 = arith.constant 0 : index
    %102 = vector.load %arg10[%c12_66, %c0_67] : memref<36x256xf32, #tpu.memory_space<vmem>>, vector<4x256xf32>
    tpu.vector_store %arg10[%c12_66, %c0_67], %101 {strides = array<i32>} : memref<36x256xf32, #tpu.memory_space<vmem>>, vector<4x256xf32>,
    %c16_68 = arith.constant 16 : index
    %c0_69 = arith.constant 0 : index
    %103 = vector.load %arg10[%c16_68, %c0_69] : memref<36x256xf32, #tpu.memory_space<vmem>>, vector<4x256xf32>
    tpu.vector_store %arg10[%c16_68, %c0_69], %78 {strides = array<i32>} : memref<36x256xf32, #tpu.memory_space<vmem>>, vector<4x256xf32>,
    %c255_i32_70 = arith.constant 255 : i32
    %104 = tpu.dynamic_rotate %78 by %c255_i32_70 dim 1 : vector<4x256xf32>, i32 -> vector<4x256xf32>
    %c5_71 = arith.constant 5 : index
    %c0_72 = arith.constant 0 : index
    %c0_73 = arith.constant 0 : index
    %105 = vector.load %arg2[%c5_71, %c0_72, %c0_73] : memref<9x1x256xf32, #tpu.memory_space<vmem>>, vector<1x1x256xf32>
    %106 = vector.shape_cast %105 : vector<1x1x256xf32> to vector<1x256xf32>
    %107 = vector.broadcast %106 : vector<1x256xf32> to vector<4x256xf32>
    %108 = arith.mulf %104, %107 : vector<4x256xf32>
    %c20_74 = arith.constant 20 : index
    %c0_75 = arith.constant 0 : index
    %109 = vector.load %arg10[%c20_74, %c0_75] : memref<36x256xf32, #tpu.memory_space<vmem>>, vector<4x256xf32>
    tpu.vector_store %arg10[%c20_74, %c0_75], %108 {strides = array<i32>} : memref<36x256xf32, #tpu.memory_space<vmem>>, vector<4x256xf32>,
    %c241_i32_76 = arith.constant 241 : i32
    %110 = tpu.dynamic_rotate %78 by %c241_i32_76 dim 1 : vector<4x256xf32>, i32 -> vector<4x256xf32>
    %c6_77 = arith.constant 6 : index
    %c0_78 = arith.constant 0 : index
    %c0_79 = arith.constant 0 : index
    %111 = vector.load %arg2[%c6_77, %c0_78, %c0_79] : memref<9x1x256xf32, #tpu.memory_space<vmem>>, vector<1x1x256xf32>
    %112 = vector.shape_cast %111 : vector<1x1x256xf32> to vector<1x256xf32>
    %113 = vector.broadcast %112 : vector<1x256xf32> to vector<4x256xf32>
    %114 = arith.mulf %110, %113 : vector<4x256xf32>
    %c24_80 = arith.constant 24 : index
    %c0_81 = arith.constant 0 : index
    %115 = vector.load %arg10[%c24_80, %c0_81] : memref<36x256xf32, #tpu.memory_space<vmem>>, vector<4x256xf32>
    tpu.vector_store %arg10[%c24_80, %c0_81], %114 {strides = array<i32>} : memref<36x256xf32, #tpu.memory_space<vmem>>, vector<4x256xf32>,
    %c240_i32_82 = arith.constant 240 : i32
    %116 = tpu.dynamic_rotate %78 by %c240_i32_82 dim 1 : vector<4x256xf32>, i32 -> vector<4x256xf32>
    %c7_83 = arith.constant 7 : index
    %c0_84 = arith.constant 0 : index
    %c0_85 = arith.constant 0 : index
    %117 = vector.load %arg2[%c7_83, %c0_84, %c0_85] : memref<9x1x256xf32, #tpu.memory_space<vmem>>, vector<1x1x256xf32>
    %118 = vector.shape_cast %117 : vector<1x1x256xf32> to vector<1x256xf32>
    %119 = vector.broadcast %118 : vector<1x256xf32> to vector<4x256xf32>
    %120 = arith.mulf %116, %119 : vector<4x256xf32>
    %c28_86 = arith.constant 28 : index
    %c0_87 = arith.constant 0 : index
    %121 = vector.load %arg10[%c28_86, %c0_87] : memref<36x256xf32, #tpu.memory_space<vmem>>, vector<4x256xf32>
    tpu.vector_store %arg10[%c28_86, %c0_87], %120 {strides = array<i32>} : memref<36x256xf32, #tpu.memory_space<vmem>>, vector<4x256xf32>,
    %c239_i32_88 = arith.constant 239 : i32
    %122 = tpu.dynamic_rotate %78 by %c239_i32_88 dim 1 : vector<4x256xf32>, i32 -> vector<4x256xf32>
    %c8_89 = arith.constant 8 : index
    %c0_90 = arith.constant 0 : index
    %c0_91 = arith.constant 0 : index
    %123 = vector.load %arg2[%c8_89, %c0_90, %c0_91] : memref<9x1x256xf32, #tpu.memory_space<vmem>>, vector<1x1x256xf32>
    %124 = vector.shape_cast %123 : vector<1x1x256xf32> to vector<1x256xf32>
    %125 = vector.broadcast %124 : vector<1x256xf32> to vector<4x256xf32>
    %126 = arith.mulf %122, %125 : vector<4x256xf32>
    %c32_92 = arith.constant 32 : index
    %c0_93 = arith.constant 0 : index
    %127 = vector.load %arg10[%c32_92, %c0_93] : memref<36x256xf32, #tpu.memory_space<vmem>>, vector<4x256xf32>
    tpu.vector_store %arg10[%c32_92, %c0_93], %126 {strides = array<i32>} : memref<36x256xf32, #tpu.memory_space<vmem>>, vector<4x256xf32>,
    %c0_94 = arith.constant 0 : index
    %c0_95 = arith.constant 0 : index
    %128 = vector.load %arg4[%c0_94, %c0_95] : memref<4x36xf32, #tpu.memory_space<vmem>>, vector<4x36xf32>
    %c0_96 = arith.constant 0 : index
    %c0_97 = arith.constant 0 : index
    %129 = vector.load %arg10[%c0_96, %c0_97] : memref<36x256xf32, #tpu.memory_space<vmem>>, vector<36x256xf32>
    %cst_98 = arith.constant dense<0.000000e+00> : vector<4x256xf32>
    %130 = tpu.matmul %128, %129, %cst_98 {dimension_numbers = #tpu.dot_dimension_numbers<[1], [0], [0], [1], [0, 0, 1, 1], [], []>} : vector<4x36xf32>, vector<36x256xf32>, vector<4x256xf32> -> vector<4x256xf32>
    %c0_99 = arith.constant 0 : index
    %c0_100 = arith.constant 0 : index
    %131 = vector.load %arg7[%c0_99, %c0_100] : memref<4x1xf32, #tpu.memory_space<vmem>>, vector<4x1xf32>
    %c0_101 = arith.constant 0 : index
    %c0_102 = arith.constant 0 : index
    %132 = vector.load %arg8[%c0_101, %c0_102] : memref<4x1xf32, #tpu.memory_space<vmem>>, vector<4x1xf32>
    %cst_103 = arith.constant dense<0.000000e+00> : vector<4xf32>
    %133 = vector.multi_reduction <add>, %130, %cst_103 [1] : vector<4x256xf32> to vector<4xf32>
    %134 = vector.shape_cast %133 : vector<4xf32> to vector<4x1xf32>
    %cst_104 = arith.constant 3.906250e-03 : f32
    %135 = vector.broadcast %cst_104 : f32 to vector<4x1xf32>
    %136 = arith.mulf %134, %135 : vector<4x1xf32>
    %137 = arith.mulf %130, %130 : vector<4x256xf32>
    %cst_105 = arith.constant dense<0.000000e+00> : vector<4xf32>
    %138 = vector.multi_reduction <add>, %137, %cst_105 [1] : vector<4x256xf32> to vector<4xf32>
    %139 = vector.shape_cast %138 : vector<4xf32> to vector<4x1xf32>
    %cst_106 = arith.constant 3.906250e-03 : f32
    %140 = vector.broadcast %cst_106 : f32 to vector<4x1xf32>
    %141 = arith.mulf %139, %140 : vector<4x1xf32>
    %142 = arith.mulf %136, %136 : vector<4x1xf32>
    %143 = arith.subf %141, %142 : vector<4x1xf32>
    %144 = vector.broadcast %136 : vector<4x1xf32> to vector<4x256xf32>
    %145 = arith.subf %130, %144 : vector<4x256xf32>
    %cst_107 = arith.constant 9.99999974E-6 : f32
    %146 = vector.broadcast %cst_107 : f32 to vector<4x1xf32>
    %147 = arith.addf %143, %146 : vector<4x1xf32>
    %148 = math.rsqrt %147 : vector<4x1xf32>
    %149 = arith.mulf %148, %131 : vector<4x1xf32>
    %150 = vector.broadcast %149 : vector<4x1xf32> to vector<4x256xf32>
    %151 = arith.mulf %145, %150 : vector<4x256xf32>
    %152 = vector.broadcast %132 : vector<4x1xf32> to vector<4x256xf32>
    %153 = arith.addf %151, %152 : vector<4x256xf32>
    %154 = arith.addf %1, %153 : vector<4x256xf32>
    %c0_108 = arith.constant 0 : index
    %c0_109 = arith.constant 0 : index
    %c0_110 = arith.constant 0 : index
    %155 = vector.load %arg9[%c0_108, %c0_109, %c0_110] : memref<1x4x256xf32, #tpu.memory_space<vmem>>, vector<1x4x256xf32>
    %156 = vector.shape_cast %155 : vector<1x4x256xf32> to vector<4x256xf32>
    %157 = vector.shape_cast %154 : vector<4x256xf32> to vector<1x4x256xf32>
    tpu.vector_store %arg9[%c0_108, %c0_109, %c0_110], %157 {strides = array<i32>} : memref<1x4x256xf32, #tpu.memory_space<vmem>>, vector<1x4x256xf32>,
    return
  }
  func.func @transform_0(%arg0: i32) -> (i32, i32, i32) {
    %c0_i32 = arith.constant 0 : i32
    %c0_i32_0 = arith.constant 0 : i32
    %c0_i32_1 = arith.constant 0 : i32
    return %arg0, %c0_i32, %c0_i32_0 : i32, i32, i32
  }
  func.func @transform_1(%arg0: i32) -> (i32, i32, i32) {
    %c0_i32 = arith.constant 0 : i32
    %c0_i32_0 = arith.constant 0 : i32
    %c0_i32_1 = arith.constant 0 : i32
    %c0_i32_2 = arith.constant 0 : i32
    return %c0_i32, %c0_i32_0, %c0_i32_1 : i32, i32, i32
  }
  func.func @transform_2(%arg0: i32) -> (i32, i32) {
    %c0_i32 = arith.constant 0 : i32
    %c0_i32_0 = arith.constant 0 : i32
    %c0_i32_1 = arith.constant 0 : i32
    return %c0_i32, %c0_i32_0 : i32, i32
  }
  func.func @transform_3(%arg0: i32) -> (i32, i32) {
    %c0_i32 = arith.constant 0 : i32
    %c0_i32_0 = arith.constant 0 : i32
    %c0_i32_1 = arith.constant 0 : i32
    return %c0_i32, %c0_i32_0 : i32, i32
  }
  func.func @transform_4(%arg0: i32) -> (i32, i32) {
    %c0_i32 = arith.constant 0 : i32
    %c0_i32_0 = arith.constant 0 : i32
    %c0_i32_1 = arith.constant 0 : i32
    return %c0_i32, %c0_i32_0 : i32, i32
  }
  func.func @transform_5(%arg0: i32) -> (i32, i32) {
    %c0_i32 = arith.constant 0 : i32
    %c0_i32_0 = arith.constant 0 : i32
    %c0_i32_1 = arith.constant 0 : i32
    return %c0_i32, %c0_i32_0 : i32, i32
  }
  func.func @transform_6(%arg0: i32) -> (i32, i32) {
    %c0_i32 = arith.constant 0 : i32
    %c0_i32_0 = arith.constant 0 : i32
    %c0_i32_1 = arith.constant 0 : i32
    return %c0_i32, %c0_i32_0 : i32, i32
  }
  func.func @transform_7(%arg0: i32) -> (i32, i32) {
    %c0_i32 = arith.constant 0 : i32
    %c0_i32_0 = arith.constant 0 : i32
    %c0_i32_1 = arith.constant 0 : i32
    return %c0_i32, %c0_i32_0 : i32, i32
  }
  func.func @transform_8(%arg0: i32) -> (i32, i32, i32) {
    %c0_i32 = arith.constant 0 : i32
    %c0_i32_0 = arith.constant 0 : i32
    %c0_i32_1 = arith.constant 0 : i32
    return %arg0, %c0_i32, %c0_i32_0 : i32, i32, i32
  }
}

</mosaic_0001>

<bundles_post_ra>
// kernel: residual_block.1
= control target key start
LH: loop header
LB: loop body
LE: loop exit
PB: predicated region body
PF: predicated region fallthrough
CT: control target
= control target key end

     0   :  { %s1189_s27 = smov 0   ;;  %s1449_s0 = inlined_call_operand.vmem [shape: f32[2,4,256], index: 0, kind: input, shape index: {}]   ;;  %s1450_s1 = inlined_call_operand.vmem [shape: f32[9,1,256], index: 1, kind: input, shape index: {}]   ;;  %s1451_s2 = inlined_call_operand.vmem [shape: f32[4,36], index: 2, kind: input, shape index: {}]   ;;  %s1452_s3 = inlined_call_operand.vmem [shape: f32[4,36], index: 3, kind: input, shape index: {}]   ;;  %s1453_s4 = inlined_call_operand.vmem [shape: f32[4,1], index: 4, kind: input, shape index: {}]   ;;  %s1454_s5 = inlined_call_operand.vmem [shape: f32[4,1], index: 5, kind: input, shape index: {}]   ;;  %s1455_s6 = inlined_call_operand.vmem [shape: f32[4,1], index: 6, kind: input, shape index: {}]   ;;  %s1456_s7 = inlined_call_operand.vmem [shape: f32[4,1], index: 7, kind: input, shape index: {}]   ;;  %s1457_s8 = inlined_call_operand.vmem [shape: f32[2,4,256], index: 8, kind: output, shape index: {}]  }
   0x1 LB: > { %s1052_s28 = sadd.s32 4294967295, %s1132_s27   ;;  %p1056_p0 = scmp.ge.s32.totalorder %s1132_s27, 1  ;;  %s1132_s27 = sphi %s1189_s27, %s18_s27  }
   0x2   : > { %p262_p1 = scmp.lt.s32.totalorder %s1132_s27, 3 }
   0x4   : > { %p263_p2 = pnand %p1056_p0, %p262_p1 }
   0x5   : > { %p296_p3 = scmp.lt.s32.totalorder (!%p263_p2), %s1052_s28, 1  ;;  %s1134_s11 = smov (!%p263_p2), 1   ;;  %v1142_v2 = vmov (!%p263_p2), 0.0   ;;  %v314_v3 = vlaneseq (!%p263_p2)  ;;  %v1063_v8 = vld [vmem:[%s1450_s1 + $0x6] sm:$0x3] (!%p263_p2)  ;;  %vm544_vm8 = vcmask (!%p263_p2), 1043456  }
   0x6   : > { %266 = sbr.rel (%p263_p2) target bundleno = 1374 (0x55e), region = 52  ;;  %s1135_s12 = smov (!%p263_p2), 16   ;;  %615 = vmatprep.mubr.f32.mxu0 (!%p263_p2), %v1142_v2  ;;  %947 = vmatprep.mubr.f32.mxu1 (!%p263_p2), %v1142_v2  ;;  %v319_v13 = vld [vmem:[%s1450_s1] sm:$0x3] (!%p263_p2)  ;;  %v1061_v14 = vld [vmem:[%s1450_s1 + $0x2] sm:$0x3] (!%p263_p2) }
   0x7   : > { %s1136_s13 = smov (!%p263_p2), 17   ;;  %s1137_s14 = smov (!%p263_p2), 15   ;;  %v322_v4 = vshrl.u32 (!%p263_p2), %v314_v3, 7  ;;  %v1234_v5 = vand.u32 (!%p263_p2), 127, %v314_v3  ;;  %v1062_v21 = vld [vmem:[%s1450_s1 + $0x4] sm:$0x3] (!%p263_p2) }
   0x8   : > { %s1138_s15 = smov (!%p263_p2), 127   ;;  %s1139_s16 = smov (!%p263_p2), 112   ;;  %v1064_v40 = vld [vmem:[%s1450_s1 + $0xa] sm:$0x3] (!%p263_p2)  ;;  %v1066_v51 = vld [vmem:[%s1450_s1 + $0xe] sm:$0x3] (!%p263_p2) }
   0x9   : > { %s1140_s17 = smov (!%p263_p2), 113   ;;  %s1141_s18 = smov (!%p263_p2), 111   ;;  %v1236_v6 = vsub.s32 (!%p263_p2), 0, %v322_v4  ;;  %v1238_v7 = vsub.s32 (!%p263_p2), 1, %v322_v4  ;;  %vm393_vm0 = vcmp.lt.s32.totalorder (!%p263_p2), %v1234_v5, 1  ;;  %vm316_vm1 = vcmp.lt.s32.totalorder (!%p263_p2), %v1234_v5, 17 }
   0xa   : > { %vm339_vm2 = vcmp.lt.s32.totalorder (!%p263_p2), %v1234_v5, 16  ;;  %vm369_vm3 = vcmp.lt.s32.totalorder (!%p263_p2), %v1234_v5, 15  ;;  %vm425_vm4 = vcmp.lt.s32.totalorder (!%p263_p2), %v1234_v5, 127  ;;  %vm479_vm5 = vcmp.lt.s32.totalorder (!%p263_p2), %v1234_v5, 112  ;;  %v1065_v60 = vld [vmem:[%s1450_s1 + $0xc] sm:$0x3] (!%p263_p2) }
   0xb   : > { %v402_v11 = vrot.slane (!%p263_p2), %v1063_v8, %v1236_v6  ;;  %v406_v12 = vrot.slane (!%p263_p2), %v1063_v8, %v1238_v7  ;;  %v324_v19 = vrot.slane (!%p263_p2), %v319_v13, %v1236_v6  ;;  %v328_v20 = vrot.slane (!%p263_p2), %v319_v13, %v1238_v7 }
   0xc   : > { %v348_v24 = vrot.slane (!%p263_p2), %v1061_v14, %v1236_v6  ;;  %v352_v25 = vrot.slane (!%p263_p2), %v1061_v14, %v1238_v7  ;;  %v378_v30 = vrot.slane (!%p263_p2), %v1062_v21, %v1236_v6  ;;  %v382_v31 = vrot.slane (!%p263_p2), %v1062_v21, %v1238_v7 }
   0xd   : > { %s1459_s28 = smov (!%p296_p3, %s1052_s28), 1  ;;  %v434_v49 = vrot.slane %v1064_v40, %v1236_v6  ;;  %v438_v50 = vrot.slane %v1064_v40, %v1238_v7  ;;  %v488_v58 = vrot.slane %v1066_v51, %v1236_v6  ;;  %v492_v59 = vrot.slane %v1066_v51, %v1238_v7 }
   0xe   : > { %s1083_s29 = sshll.u32 %s1459_s28, 3  ;;  %vm455_vm6 = vcmp.lt.s32.totalorder %v1234_v5, 113  ;;  %vm509_vm7 = vcmp.lt.s32.totalorder %v1234_v5, 111  ;;  %vm540_vm9 = vcmask 293888   ;;  %v863_v5 = vld [vmem:[%s1452_s3] sm:$0xf] }
   0xf   : > { %s300_s10 = scalar_lea.vmem %s1449_s0, %s1083_s29 }
  0x10   : > { %v1205_v0 = vld [vmem:[%s300_s10] sm:$0xff] }
  0x11   : > { %389 = vrot.lane.b32.xlu1 %v1205_v0, %s1134_s11  ;;  %419 = vst [vmem:[#allocation2 + $0x20] sm:$0xf] %v1205_v0  ;;  %335 = vrot.lane.b32.xlu0 %v1205_v0, %s1135_s12  ;;  %v308_v1 = vcombine.high %v1205_v0, %v1205_v0 }
  0x13   : > { %420 = vst [vmem:[#allocation2 + $0x28] sm:$0xf] %v308_v1 }
  0x15   : > { %310 = vrot.lane.b32.xlu0 %v1205_v0, %s1136_s13  ;;  %391 = vrot.lane.b32.xlu1 %v308_v1, %s1134_s11 }
  0x19   : > { %312 = vrot.lane.b32.xlu1 %v308_v1, %s1136_s13  ;;  %337 = vrot.lane.b32.xlu0 %v308_v1, %s1135_s12 }
  0x1d   : > { %367 = vrot.lane.b32.xlu1 %v308_v1, %s1137_s14  ;;  %365 = vrot.lane.b32.xlu0 %v1205_v0, %s1137_s14 }
  0x21   : > { %423 = vrot.lane.b32.xlu1 %v308_v1, %s1138_s15  ;;  %421 = vrot.lane.b32.xlu0 %v1205_v0, %s1138_s15 }
  0x25   : > { %477 = vrot.lane.b32.xlu1 %v308_v1, %s1139_s16  ;;  %475 = vrot.lane.b32.xlu0 %v1205_v0, %s1139_s16 }
  0x29   : > { %453 = vrot.lane.b32.xlu1 %v308_v1, %s1140_s17  ;;  %451 = vrot.lane.b32.xlu0 %v1205_v0, %s1140_s17 }
  0x2d   : > { %507 = vrot.lane.b32.xlu1 %v308_v1, %s1141_s18  ;;  %505 = vrot.lane.b32.xlu0 %v1205_v0, %s1141_s18 }
  0x83   : > { %v390_v9 = vpop.permute.xlu1 %389  ;;  %v336_v10 = vpop.permute.xlu0 %335 }
  0x87   : > { %v311_v15 = vpop.permute.xlu0 %310  ;;  %v392_v16 = vpop.permute.xlu1 %391 }
  0x88   : > { %v394_v17 = vsel %vm393_vm0, %v390_v9, %v392_v16  ;;  %v395_v18 = vsel %vm393_vm0, %v392_v16, %v390_v9  ;;  %v464_v9 = vrot.slane %v1065_v60, %v1236_v6 }
  0x89   : > { %v409_v22 = vmul.f32 %v402_v11, %v395_v18  ;;  %v410_v23 = vmul.f32 %v406_v12, %v394_v17  ;;  %v1067_v12 = vld [vmem:[%s1450_s1 + $0x10] sm:$0x3] }
  0x8b   : > { %v413_v26 = vrot.slane %v409_v22, 4  ;;  %v414_v27 = vrot.slane %v410_v23, 4  ;;  %v313_v28 = vpop.permute.xlu1 %312  ;;  %v338_v29 = vpop.permute.xlu0 %337 }
  0x8c   : > { %v317_v32 = vsel %vm316_vm1, %v311_v15, %v313_v28  ;;  %v318_v33 = vsel %vm316_vm1, %v313_v28, %v311_v15  ;;  %v340_v34 = vsel %vm339_vm2, %v336_v10, %v338_v29  ;;  %v341_v35 = vsel %vm339_vm2, %v338_v29, %v336_v10 }
  0x8d   : > { %417 = vst [vmem:[#allocation2 + $0x10] sm:$0xf0] %v413_v26  ;;  %418 = vst [vmem:[#allocation2 + $0x18] sm:$0xf0] %v414_v27  ;;  %v331_v36 = vmul.f32 %v324_v19, %v318_v33  ;;  %v332_v37 = vmul.f32 %v328_v20, %v317_v32  ;;  %v355_v38 = vmul.f32 %v348_v24, %v341_v35 }
  0x8e   : > { %v356_v39 = vmul.f32 %v352_v25, %v340_v34  ;;  %v468_v10 = vrot.slane %v1065_v60, %v1238_v7  ;;  %v518_v26 = vrot.slane %v1067_v12, %v1236_v6  ;;  %v522_v27 = vrot.slane %v1067_v12, %v1238_v7 }
  0x8f   : > { %333 = vst [vmem:[#allocation2] sm:$0xf] %v331_v36  ;;  %334 = vst [vmem:[#allocation2 + $0x8] sm:$0xf] %v332_v37  ;;  %v359_v41 = vrot.slane %v355_v38, 4  ;;  %v368_v43 = vpop.permute.xlu1 %367  ;;  %v366_v44 = vpop.permute.xlu0 %365 }
  0x90   : > { %v360_v42 = vrot.slane %v356_v39, 4  ;;  %v370_v45 = vsel %vm369_vm3, %v366_v44, %v368_v43  ;;  %v371_v46 = vsel %vm369_vm3, %v368_v43, %v366_v44 }
  0x91   : > { %363 = vst [vmem:[#allocation2] sm:$0xf0] %v359_v41  ;;  %v385_v47 = vmul.f32 %v378_v30, %v371_v46  ;;  %v386_v48 = vmul.f32 %v382_v31, %v370_v45 }
  0x92   : > { %364 = vst [vmem:[#allocation2 + $0x8] sm:$0xf0] %v360_v42  ;;  %v529_v42 = vld [vmem:[%s1451_s2] sm:$0xf] }
  0x93   : > { %387 = vst [vmem:[#allocation2 + $0x10] sm:$0xf] %v385_v47  ;;  %388 = vst [vmem:[#allocation2 + $0x18] sm:$0xf] %v386_v48  ;;  %v424_v52 = vpop.permute.xlu1 %423  ;;  %v422_v53 = vpop.permute.xlu0 %421 }
  0x94   : > { %v426_v54 = vsel %vm425_vm4, %v422_v53, %v424_v52  ;;  %v427_v55 = vsel %vm425_vm4, %v424_v52, %v422_v53  ;;  %v1143_v53 = vmov 0  }
  0x95   : > { %v441_v56 = vmul.f32 %v434_v49, %v426_v54  ;;  %v442_v57 = vmul.f32 %v438_v50, %v427_v55  ;;  %1119 = vset.pattern.permute.xlu0 %v1143_v53  ;;  %1120 = vset.pattern.permute.xlu1 %v1143_v53  ;;  %v623_v54 = vld [vmem:[%s1454_s5] sm:$0xf] }
  0x97   : > { %v445_v61 = vrot.slane %v441_v56, 4  ;;  %v446_v62 = vrot.slane %v442_v57, 4  ;;  %v478_v63 = vpop.permute.xlu1 %477  ;;  %v476_v1 = vpop.permute.xlu0 %475 }
  0x98   : > { %v480_v2 = vsel %vm479_vm5, %v476_v1, %v478_v63  ;;  %v481_v3 = vsel %vm479_vm5, %v478_v63, %v476_v1  ;;  %v530_v14 = vld [vmem:[#allocation2] sm:$0xff] }
  0x99   : > { %449 = vst [vmem:[#allocation2 + $0x20] sm:$0xf0] %v445_v61  ;;  %450 = vst [vmem:[#allocation2 + $0x28] sm:$0xf0] %v446_v62  ;;  %v495_v4 = vmul.f32 %v488_v58, %v480_v2  ;;  %v496_v8 = vmul.f32 %v492_v59, %v481_v3  ;;  %v531_v11 = vld [vmem:[#allocation2 + $0x8] sm:$0xff] }
  0x9a   : > { %v533_v13 = vld [vmem:[#allocation2 + $0x18] sm:$0xff]  ;;  %v532_v15 = vld [vmem:[#allocation2 + $0x10] sm:$0xff]  ;;  %v622_v1 = vld [vmem:[%s1453_s4] sm:$0xf] }
  0x9b   : > { %v499_v16 = vrot.slane %v495_v4, 4  ;;  %v500_v17 = vrot.slane %v496_v8, 4  ;;  %v454_v18 = vpop.permute.xlu1 %453  ;;  %v452_v19 = vpop.permute.xlu0 %451  ;;  %v1085_v20 = vpack.c.bf16 %v533_v13, %v531_v11  ;;  %v1087_v21 = vpack.c.bf16 %v532_v15, %v530_v14  ;;  %v1071_v15 = vld [vmem:[%s1450_s1 + $0x2] sm:$0x3] }
  0x9c   : > { %v456_v22 = vsel %vm455_vm6, %v452_v19, %v454_v18  ;;  %v457_v23 = vsel %vm455_vm6, %v454_v18, %v452_v19  ;;  %v698_v18 = vrot.slane %v1071_v15, %v1238_v7 }
  0x9d   : > { %503 = vst [vmem:[#allocation2 + $0x30] sm:$0xf0] %v499_v16  ;;  %504 = vst [vmem:[#allocation2 + $0x38] sm:$0xf0] %v500_v17  ;;  %v471_v24 = vmul.f32 %v464_v9, %v456_v22  ;;  %v472_v25 = vmul.f32 %v468_v10, %v457_v23  ;;  %1086 = vmatprep.subr.bf16.mxu0 %v1085_v20  ;;  %v694_v17 = vrot.slane %v1071_v15, %v1236_v6 }
  0x9e   : > { %1088 = vmatpush1.bf16.msra.mxu0 %v1087_v21 }
  0x9f   : > { %473 = vst [vmem:[#allocation2 + $0x30] sm:$0xf] %v471_v24  ;;  %474 = vst [vmem:[#allocation2 + $0x38] sm:$0xf] %v472_v25  ;;  %v508_v28 = vpop.permute.xlu1 %507  ;;  %v506_v29 = vpop.permute.xlu0 %505  ;;  %v1073_v24 = vld [vmem:[%s1450_s1 + $0x6] sm:$0x3] }
  0xa0   : > { %v510_v30 = vsel %vm509_vm7, %v506_v29, %v508_v28  ;;  %v511_v31 = vsel %vm509_vm7, %v508_v28, %v506_v29  ;;  %v535_v34 = vld [vmem:[#allocation2 + $0x28] sm:$0xff]  ;;  %v534_v36 = vld [vmem:[#allocation2 + $0x20] sm:$0xff]  ;;  %v744_v28 = vrot.slane %v1073_v24, %v1236_v6  ;;  %v748_v29 = vrot.slane %v1073_v24, %v1238_v7 }
  0xa1   : > { %v525_v32 = vmul.f32 %v518_v26, %v510_v30  ;;  %v526_v33 = vmul.f32 %v522_v27, %v511_v31 }
  0xa3   : > { %527 = vst [vmem:[#allocation2 + $0x40] sm:$0xf] %v525_v32  ;;  %528 = vst [vmem:[#allocation2 + $0x48] sm:$0xf] %v526_v33 }
  0xa6   : > { %v537_v35 = vld [vmem:[#allocation2 + $0x38] sm:$0xff]  ;;  %v536_v37 = vld [vmem:[#allocation2 + $0x30] sm:$0xff] }
  0xa7   : > { %v1089_v38 = vpack.c.bf16 %v537_v35, %v535_v34  ;;  %v1091_v39 = vpack.c.bf16 %v536_v37, %v534_v36  ;;  %v667_v35 = vld [vmem:[%s1450_s1] sm:$0x3] }
  0xa9   : > { %1090 = vmatprep.subr.bf16.mxu0 %v1089_v38 }
  0xaa   : > { %1092 = vmatpush1.bf16.msra.mxu0 %v1091_v39  ;;  %v539_v40 = vld [vmem:[#allocation2 + $0x48] sm:$0xf]  ;;  %v538_v41 = vld [vmem:[#allocation2 + $0x40] sm:$0xf] }
  0xab   : > { %1068 = vmatprep.subr.msk.mxu0 %vm544_vm8, %v539_v40  ;;  %v672_v40 = vrot.slane %v667_v35, %v1236_v6 }
  0xae   : > { %1069 = vmatpush1.msk.msra.mxu0 %vm544_vm8, %v538_v41  ;;  %v676_v41 = vrot.slane %v667_v35, %v1238_v7 }
  0xaf   : > { %1070 = vmatmul.mubr.msk.f32.vlgmr.msra.gmra.mrb[0].mxu0 %vm540_vm9, %v529_v42  ;;  %v1072_v42 = vld [vmem:[%s1450_s1 + $0x4] sm:$0x3] }
 0x182   : > { %v617_v43 = vpop.f32.mrb[0].mxu0 }
 0x183   : > { %v630_v44 = vmul.f32 %v617_v43, %v617_v43  ;;  %v619_v45 = vpop.f32.mrb[1].mxu0  ;;  %v624_v46 = vsel %vm544_vm8, %v617_v43, 0.0 }
 0x184   : > { %v625_v47 = vsel %vm544_vm8, %v619_v45, 0.0  ;;  %v631_v48 = vmul.f32 %v619_v45, %v619_v45 }
 0x185   : > { %v626_v49 = vadd.f32 %v625_v47, %v624_v46  ;;  %v632_v50 = vsel %vm544_vm8, %v630_v44, 0.0 }
 0x186   : > { %v633_v51 = vsel %vm544_vm8, %v631_v48, 0.0 }
 0x187   : > { %627 = vadd.xlane.f32.xlu0 %v626_v49  ;;  %v634_v52 = vadd.f32 %v633_v51, %v632_v50  ;;  %v722_v49 = vrot.slane %v1072_v42, %v1236_v6  ;;  %v726_v50 = vrot.slane %v1072_v42, %v1238_v7  ;;  %v1074_v51 = vld [vmem:[%s1450_s1 + $0xa] sm:$0x3] }
 0x189   : > { %635 = vadd.xlane.f32.xlu1 %v634_v52 }
 0x19a   : > { %654 = vperm.xlu1 %1120, %v623_v54  }
 0x214   : > { %v628_v55 = vpop.xlane.xlu0 %627 }
 0x215   : > { %v629_v56 = vmul.f32 0.00390625, %v628_v55 }
 0x216   : > { %v636_v57 = vpop.xlane.xlu1 %635 }
 0x217   : > { %v637_v58 = vmul.f32 0.00390625, %v636_v57  ;;  %v638_v59 = vmul.f32 %v629_v56, %v629_v56  ;;  %v640_v60 = vsub.f32 %v617_v43, %v629_v56  ;;  %v641_v61 = vsub.f32 %v619_v45, %v629_v56 }
 0x218   : > { %v774_v57 = vrot.slane %v1074_v51, %v1236_v6 }
 0x219   : > { %v639_v62 = vsub.f32 %v637_v58, %v638_v59  ;;  %v778_v58 = vrot.slane %v1074_v51, %v1238_v7  ;;  %v1076_v59 = vld [vmem:[%s1450_s1 + $0xe] sm:$0x3] }
 0x21a   : > { %v655_v8 = vpop.permute.xlu1 %654 }
 0x21b   : > { %v642_v63 = vadd.f32 1e-05, %v639_v62 }
 0x21d   : > { %1122 = vrsqrt.f32 %v642_v63 }
 0x227   : > { %v1123_v2 = vpop.eup %1122 }
 0x228   : > { %v644_v3 = vmul.f32 %v1123_v2, %v622_v1 }
 0x22a   : > { %647 = vperm.xlu0 %1119, %v644_v3   ;;  %v824_v3 = vrot.slane %v1076_v59, %v1236_v6 }
 0x2a9   : > { %v648_v4 = vpop.permute.xlu0 %647 }
 0x2aa   : > { %v650_v9 = vmul.f32 %v648_v4, %v640_v60  ;;  %v651_v10 = vmul.f32 %v648_v4, %v641_v61  ;;  %v828_v4 = vrot.slane %v1076_v59, %v1238_v7 }
 0x2ac   : > { %v657_v11 = vadd.f32 %v655_v8, %v650_v9  ;;  %v658_v12 = vadd.f32 %v655_v8, %v651_v10  ;;  %v1075_v8 = vld [vmem:[%s1450_s1 + $0xc] sm:$0x3] }
 0x2ae   : > { %v659_v13 = vmax.f32 %v657_v11, 0.0  ;;  %v660_v14 = vmax.f32 %v658_v12, 0.0 }
 0x2b0   : > { %761 = vst [vmem:[#allocation2 + $0x20] sm:$0xf] %v659_v13  ;;  %762 = vst [vmem:[#allocation2 + $0x28] sm:$0xf] %v660_v14  ;;  %711 = vrot.lane.b32.xlu0 %v659_v13, %s1137_s14  ;;  %683 = vrot.lane.b32.xlu1 %v659_v13, %s1135_s12 }
 0x2b4   : > { %763 = vrot.lane.b32.xlu0 %v659_v13, %s1138_s15  ;;  %685 = vrot.lane.b32.xlu1 %v660_v14, %s1135_s12 }
 0x2b8   : > { %813 = vrot.lane.b32.xlu0 %v659_v13, %s1139_s16  ;;  %733 = vrot.lane.b32.xlu1 %v659_v13, %s1134_s11 }
 0x2bc   : > { %791 = vrot.lane.b32.xlu0 %v659_v13, %s1140_s17  ;;  %735 = vrot.lane.b32.xlu1 %v660_v14, %s1134_s11 }
 0x2c0   : > { %841 = vrot.lane.b32.xlu0 %v659_v13, %s1141_s18  ;;  %661 = vrot.lane.b32.xlu1 %v659_v13, %s1136_s13 }
 0x2c4   : > { %663 = vrot.lane.b32.xlu1 %v660_v14, %s1136_s13 }
 0x2c8   : > { %713 = vrot.lane.b32.xlu1 %v660_v14, %s1137_s14 }
 0x2cc   : > { %765 = vrot.lane.b32.xlu1 %v660_v14, %s1138_s15  ;;  %s305_s15 = scalar_lea.vmem %s1457_s8, %s1083_s29 }
 0x2d0   : > { %815 = vrot.lane.b32.xlu1 %v660_v14, %s1139_s16 }
 0x2d4   : > { %793 = vrot.lane.b32.xlu1 %v660_v14, %s1140_s17 }
 0x2d8   : > { %843 = vrot.lane.b32.xlu1 %v660_v14, %s1141_s18 }
 0x322   : > { %v684_v16 = vpop.permute.xlu1 %683  ;;  %v712_v36 = vpop.permute.xlu0 %711 }
 0x326   : > { %v686_v19 = vpop.permute.xlu1 %685  ;;  %v764_v46 = vpop.permute.xlu0 %763 }
 0x327   : > { %v687_v20 = vsel %vm339_vm2, %v684_v16, %v686_v19  ;;  %v688_v21 = vsel %vm339_vm2, %v686_v19, %v684_v16 }
 0x328   : > { %v701_v22 = vmul.f32 %v694_v17, %v688_v21  ;;  %v702_v23 = vmul.f32 %v698_v18, %v687_v20  ;;  %v802_v17 = vrot.slane %v1075_v8, %v1236_v6  ;;  %v806_v18 = vrot.slane %v1075_v8, %v1238_v7  ;;  %v1077_v20 = vld [vmem:[%s1450_s1 + $0x10] sm:$0x3] }
 0x32a   : > { %v705_v25 = vrot.slane %v701_v22, 4  ;;  %v706_v26 = vrot.slane %v702_v23, 4  ;;  %v734_v27 = vpop.permute.xlu1 %733  ;;  %v814_v60 = vpop.permute.xlu0 %813 }
 0x32c   : > { %709 = vst [vmem:[#allocation2] sm:$0xf0] %v705_v25  ;;  %710 = vst [vmem:[#allocation2 + $0x8] sm:$0xf0] %v706_v26 }
 0x32e   : > { %v736_v30 = vpop.permute.xlu1 %735  ;;  %v792_v14 = vpop.permute.xlu0 %791 }
 0x32f   : > { %v737_v31 = vsel %vm393_vm0, %v734_v27, %v736_v30  ;;  %v738_v32 = vsel %vm393_vm0, %v736_v30, %v734_v27 }
 0x330   : > { %v751_v33 = vmul.f32 %v744_v28, %v738_v32  ;;  %v752_v34 = vmul.f32 %v748_v29, %v737_v31 }
 0x332   : > { %v755_v37 = vrot.slane %v751_v33, 4  ;;  %v756_v38 = vrot.slane %v752_v34, 4  ;;  %v662_v39 = vpop.permute.xlu1 %661  ;;  %v852_v33 = vrot.slane %v1077_v20, %v1236_v6  ;;  %v856_v34 = vrot.slane %v1077_v20, %v1238_v7  ;;  %v842_v35 = vpop.permute.xlu0 %841 }
 0x334   : > { %759 = vst [vmem:[#allocation2 + $0x10] sm:$0xf0] %v755_v37  ;;  %760 = vst [vmem:[#allocation2 + $0x18] sm:$0xf0] %v756_v38 }
 0x336   : > { %v664_v43 = vpop.permute.xlu1 %663 }
 0x337   : > { %v665_v44 = vsel %vm316_vm1, %v662_v39, %v664_v43  ;;  %v666_v45 = vsel %vm316_vm1, %v664_v43, %v662_v39 }
 0x338   : > { %v679_v47 = vmul.f32 %v672_v40, %v666_v45  ;;  %v680_v48 = vmul.f32 %v676_v41, %v665_v44 }
 0x33a   : > { %681 = vst [vmem:[#allocation2] sm:$0xf] %v679_v47  ;;  %682 = vst [vmem:[#allocation2 + $0x8] sm:$0xf] %v680_v48  ;;  %v714_v52 = vpop.permute.xlu1 %713 }
 0x33b   : > { %v715_v53 = vsel %vm369_vm3, %v712_v36, %v714_v52  ;;  %v716_v54 = vsel %vm369_vm3, %v714_v52, %v712_v36 }
 0x33c   : > { %v729_v55 = vmul.f32 %v722_v49, %v716_v54  ;;  %v730_v56 = vmul.f32 %v726_v50, %v715_v53 }
 0x33e   : > { %731 = vst [vmem:[#allocation2 + $0x10] sm:$0xf] %v729_v55  ;;  %732 = vst [vmem:[#allocation2 + $0x18] sm:$0xf] %v730_v56  ;;  %v766_v61 = vpop.permute.xlu1 %765 }
 0x33f   : > { %v767_v62 = vsel %vm425_vm4, %v764_v46, %v766_v61  ;;  %v768_v63 = vsel %vm425_vm4, %v766_v61, %v764_v46 }
 0x340   : > { %v781_v1 = vmul.f32 %v774_v57, %v767_v62  ;;  %v782_v2 = vmul.f32 %v778_v58, %v768_v63  ;;  %v955_v57 = vld [vmem:[%s1456_s7] sm:$0xf] }
 0x341   : > { %v865_v19 = vld [vmem:[#allocation2 + $0x8] sm:$0xff]  ;;  %v864_v22 = vld [vmem:[#allocation2] sm:$0xff] }
 0x342   : > { %v785_v9 = vrot.slane %v781_v1, 4  ;;  %v786_v10 = vrot.slane %v782_v2, 4  ;;  %v816_v11 = vpop.permute.xlu1 %815 }
 0x343   : > { %v817_v12 = vsel %vm479_vm5, %v814_v60, %v816_v11  ;;  %v818_v13 = vsel %vm479_vm5, %v816_v11, %v814_v60 }
 0x344   : > { %789 = vst [vmem:[#allocation2 + $0x20] sm:$0xf0] %v785_v9  ;;  %790 = vst [vmem:[#allocation2 + $0x28] sm:$0xf0] %v786_v10  ;;  %v831_v15 = vmul.f32 %v824_v3, %v817_v12  ;;  %v832_v16 = vmul.f32 %v828_v4, %v818_v13  ;;  %v954_v4 = vld [vmem:[%s1455_s6] sm:$0xf] }
 0x345   : > { %v867_v21 = vld [vmem:[#allocation2 + $0x18] sm:$0xff]  ;;  %v866_v23 = vld [vmem:[#allocation2 + $0x10] sm:$0xff] }
 0x346   : > { %v835_v24 = vrot.slane %v831_v15, 4  ;;  %v836_v25 = vrot.slane %v832_v16, 4  ;;  %v794_v26 = vpop.permute.xlu1 %793  ;;  %v1093_v27 = vpack.c.bf16 %v867_v21, %v865_v19  ;;  %v1095_v28 = vpack.c.bf16 %v866_v23, %v864_v22 }
 0x347   : > { %v795_v29 = vsel %vm455_vm6, %v792_v14, %v794_v26  ;;  %v796_v30 = vsel %vm455_vm6, %v794_v26, %v792_v14 }
 0x348   : > { %839 = vst [vmem:[#allocation2 + $0x30] sm:$0xf0] %v835_v24  ;;  %840 = vst [vmem:[#allocation2 + $0x38] sm:$0xf0] %v836_v25  ;;  %v809_v31 = vmul.f32 %v802_v17, %v795_v29  ;;  %v810_v32 = vmul.f32 %v806_v18, %v796_v30  ;;  %1094 = vmatprep.subr.bf16.mxu1 %v1093_v27 }
 0x349   : > { %1096 = vmatpush1.bf16.msra.mxu1 %v1095_v28 }
 0x34a   : > { %811 = vst [vmem:[#allocation2 + $0x30] sm:$0xf] %v809_v31  ;;  %812 = vst [vmem:[#allocation2 + $0x38] sm:$0xf] %v810_v32  ;;  %v844_v36 = vpop.permute.xlu1 %843 }
 0x34b   : > { %v845_v37 = vsel %vm509_vm7, %v842_v35, %v844_v36  ;;  %v846_v38 = vsel %vm509_vm7, %v844_v36, %v842_v35  ;;  %v869_v41 = vld [vmem:[#allocation2 + $0x28] sm:$0xff]  ;;  %v868_v6 = vld [vmem:[#allocation2 + $0x20] sm:$0xff] }
 0x34c   : > { %v859_v39 = vmul.f32 %v852_v33, %v845_v37  ;;  %v860_v40 = vmul.f32 %v856_v34, %v846_v38 }
 0x34e   : > { %861 = vst [vmem:[#allocation2 + $0x40] sm:$0xf] %v859_v39  ;;  %862 = vst [vmem:[#allocation2 + $0x48] sm:$0xf] %v860_v40 }
 0x351   : > { %v871_v42 = vld [vmem:[#allocation2 + $0x38] sm:$0xff]  ;;  %v870_v43 = vld [vmem:[#allocation2 + $0x30] sm:$0xff] }
 0x352   : > { %v1097_v7 = vpack.c.bf16 %v871_v42, %v869_v41  ;;  %v1099_v44 = vpack.c.bf16 %v870_v43, %v868_v6 }
 0x354   : > { %1098 = vmatprep.subr.bf16.mxu1 %v1097_v7 }
 0x355   : > { %1100 = vmatpush1.bf16.msra.mxu1 %v1099_v44  ;;  %v873_v45 = vld [vmem:[#allocation2 + $0x48] sm:$0xf]  ;;  %v872_v46 = vld [vmem:[#allocation2 + $0x40] sm:$0xf] }
 0x356   : > { %1078 = vmatprep.subr.msk.mxu1 %vm544_vm8, %v873_v45 }
 0x359   : > { %1079 = vmatpush1.msk.msra.mxu1 %vm544_vm8, %v872_v46 }
 0x35a   : > { %1080 = vmatmul.mubr.msk.f32.vlgmr.msra.gmra.mrb[0].mxu1 %vm540_vm9, %v863_v5 }
 0x42d   : > { %v949_v47 = vpop.f32.mrb[0].mxu1 }
 0x42e   : > { %v962_v48 = vmul.f32 %v949_v47, %v949_v47  ;;  %v951_v49 = vpop.f32.mrb[1].mxu1  ;;  %v956_v50 = vsel %vm544_vm8, %v949_v47, 0.0 }
 0x42f   : > { %v957_v51 = vsel %vm544_vm8, %v951_v49, 0.0  ;;  %v963_v52 = vmul.f32 %v951_v49, %v951_v49 }
 0x430   : > { %v958_v53 = vadd.f32 %v957_v51, %v956_v50  ;;  %v964_v54 = vsel %vm544_vm8, %v962_v48, 0.0 }
 0x431   : > { %v965_v55 = vsel %vm544_vm8, %v963_v52, 0.0 }
 0x432   : > { %959 = vadd.xlane.f32.xlu0 %v958_v53  ;;  %v966_v56 = vadd.f32 %v965_v55, %v964_v54 }
 0x434   : > { %967 = vadd.xlane.f32.xlu1 %v966_v56 }
 0x445   : > { %986 = vperm.xlu1 %1120, %v955_v57  }
 0x4bf   : > { %v960_v58 = vpop.xlane.xlu0 %959 }
 0x4c0   : > { %v961_v59 = vmul.f32 0.00390625, %v960_v58 }
 0x4c1   : > { %v968_v60 = vpop.xlane.xlu1 %967 }
 0x4c2   : > { %v969_v61 = vmul.f32 0.00390625, %v968_v60  ;;  %v970_v62 = vmul.f32 %v961_v59, %v961_v59  ;;  %v972_v63 = vsub.f32 %v949_v47, %v961_v59  ;;  %v973_v1 = vsub.f32 %v951_v49, %v961_v59 }
 0x4c4   : > { %v971_v2 = vsub.f32 %v969_v61, %v970_v62 }
 0x4c5   : > { %v987_v13 = vpop.permute.xlu1 %986 }
 0x4c6   : > { %v974_v3 = vadd.f32 1e-05, %v971_v2 }
 0x4c8   : > { %1124 = vrsqrt.f32 %v974_v3 }
 0x4d2   : > { %v1125_v8 = vpop.eup %1124 }
 0x4d3   : > { %v976_v9 = vmul.f32 %v1125_v8, %v954_v4 }
 0x4d5   : > { %979 = vperm.xlu0 %1119, %v976_v9  }
 0x554   : > { %v980_v10 = vpop.permute.xlu0 %979 }
 0x555   : > { %v982_v11 = vmul.f32 %v980_v10, %v972_v63  ;;  %v983_v12 = vmul.f32 %v980_v10, %v973_v1 }
 0x557   : > { %v989_v14 = vadd.f32 %v987_v13, %v982_v11  ;;  %v990_v15 = vadd.f32 %v987_v13, %v983_v12 }
 0x559   : > { %v993_v16 = vcombine.low %v989_v14, %v990_v15 }
 0x55b   : > { %v995_v17 = vadd.f32 %v993_v16, %v1205_v0 }
 0x55d   : > { %996 = vst [vmem:[%s305_s15] sm:$0xff] %v995_v17 }
 0x55e PF: > { %s18_s27 = sadd.s32 1, %s1132_s27  }
 0x55f   : > { %p15_p4 = scmp.ge.s32.totalorder %s18_s27, 4  }
 0x561   :  { %17 = sbr.rel (!%p15_p4) target bundleno = 1 (0x1), region = 89 }

</bundles_post_ra>
